<compile_context>
chip_gen: v7x
topology: tpu7x:2x2x1
jax: 0.10.0
libtpu: 0.0.40
codegen_flags: <defaults>
</compile_context>

<pallas_src>
import jax
import jax.numpy as jnp
from jax.experimental import pallas as pl
from jax.experimental.pallas import tpu as pltpu

_CLAMP_MIN = 1e-4
_LANE = 128
_SUB = 8
# (2048, 128) f32 tile = 1 MiB; 2 inputs x 2 pipeline buffers = 4 MiB VMEM,
# safely under the default scoped VMEM limit on v5e/v6e/v7x.
_MAX_BLOCK_ROWS = 2048


def _make_nll_partial_kernel(block_rows, total_rows):
    """Kernel factory: per grid step, write an (8, 128) lanewise partial sum."""
    needs_mask = (total_rows % block_rows) != 0

    def kernel(x_ref, t_ref, o_ref):
        x = x_ref[...].astype(jnp.float32)
        t = t_ref[...].astype(jnp.float32)
        loss = -(t * jnp.log(jnp.maximum(x, jnp.float32(_CLAMP_MIN))))
        if needs_mask:
            i = pl.program_id(0)
            row = jax.lax.broadcasted_iota(jnp.int32, (block_rows, _LANE), 0)
            valid = (i * block_rows + row) < total_rows
            loss = jnp.where(valid, loss, jnp.float32(0.0))
        # Reduction over the leading (non-minor) axis -> pure VPU vreg adds;
        # output stays lane-dense (8, 128) so stores are unmasked.
        o_ref[...] = jnp.sum(loss.reshape(block_rows // _SUB, _SUB, _LANE), axis=0)

    return kernel


def negative_log_loss(inp, target):
    """Pallas TPU implementation of:
        clamped = clamp(input, min=1e-4)
        loss    = -(target * log(clamped))
        return loss.mean()
    """
    assert inp.shape == target.shape
    n = inp.size

    xf = inp.reshape(-1)
    tf = target.reshape(-1)

    # Zero-copy (rows, 128) view when the element count is lane-aligned (the common
    # case). Otherwise pad only the sub-128 remainder (x->1.0, t->0.0 contributes
    # exactly 0); this rare fallback is the only path that materializes a copy.
    if n % _LANE != 0:
        pad = _LANE - (n % _LANE)
        xf = jnp.pad(xf, (0, pad), constant_values=1.0)
        tf = jnp.pad(tf, (0, pad), constant_values=0.0)
    rows = xf.size // _LANE
    x2 = xf.reshape(rows, _LANE)
    t2 = tf.reshape(rows, _LANE)

    block_rows = min(_MAX_BLOCK_ROWS, max(_SUB, (rows // _SUB) * _SUB))
    num_blocks = pl.cdiv(rows, block_rows)
    grid = (num_blocks,)

    in_bytes = n * (inp.dtype.itemsize + target.dtype.itemsize)
    out_bytes = num_blocks * _SUB * _LANE * 4

    partials = pl.pallas_call(
        _make_nll_partial_kernel(block_rows, rows),
        out_shape=jax.ShapeDtypeStruct((num_blocks * _SUB, _LANE), jnp.float32),
        grid_spec=pltpu.PrefetchScalarGridSpec(
            num_scalar_prefetch=0,
            grid=grid,
            in_specs=[
                pl.BlockSpec((block_rows, _LANE), lambda i: (i, 0)),
                pl.BlockSpec((block_rows, _LANE), lambda i: (i, 0)),
            ],
            out_specs=pl.BlockSpec((_SUB, _LANE), lambda i: (i, 0)),
        ),
        compiler_params=pltpu.CompilerParams(
            dimension_semantics=("parallel",),
        ),
        cost_estimate=pl.CostEstimate(
            flops=3 * n,
            transcendentals=n,
            bytes_accessed=in_bytes + out_bytes,
        ),
    )(x2, t2)

    # Tiny final cross-lane reduce over (num_blocks*8, 128) partials, then the mean.
    return (jnp.sum(partials) / jnp.float32(n)).astype(jnp.float32)


if __name__ == "__main__":
    key = jax.random.PRNGKey(0)
    k1, k2 = jax.random.split(key)

    # Small NCHW-like shapes (probabilities vs. soft targets).
    shape = (2, 4, 16, 16)
    x = jax.random.uniform(k1, shape, dtype=jnp.float32)
    t = jax.random.uniform(k2, shape, dtype=jnp.float32)

    out = negative_log_loss(x, t)
    out = jax.block_until_ready(out)

    # Reference check in plain JAX (same math as the PyTorch module).
    ref = jnp.mean(-(t * jnp.log(jnp.maximum(x, 1e-4))))
    assert jnp.allclose(out, ref, rtol=1e-5, atol=1e-6), (out, ref)

    print("KERNEL_OK")
</pallas_src>

<mosaic_0001>
module attributes {stable_mosaic.version = 11 : i64} {
  func.func @kernel(%arg0: i32, %arg1: memref<16x128xf32, #tpu.memory_space<vmem>>, %arg2: memref<16x128xf32, #tpu.memory_space<vmem>>, %arg3: memref<8x128xf32, #tpu.memory_space<vmem>>) attributes {dimension_semantics = [#tpu.dimension_semantics<parallel>], iteration_bounds = array<i64: 1>, scalar_prefetch = 0 : i64, scratch_operands = 0 : i64, tpu.core_type = #tpu.core_type<tc>, window_params = [{transform_indices = @transform_0, window_bounds = array<i64: 16, 128>}, {transform_indices = @transform_1, window_bounds = array<i64: 16, 128>}, {transform_indices = @transform_2, window_bounds = array<i64: 8, 128>}]} {
    %c0 = arith.constant 0 : index
    %c0_0 = arith.constant 0 : index
    %0 = vector.load %arg1[%c0, %c0_0] : memref<16x128xf32, #tpu.memory_space<vmem>>, vector<16x128xf32>
    %c0_1 = arith.constant 0 : index
    %c0_2 = arith.constant 0 : index
    %1 = vector.load %arg2[%c0_1, %c0_2] : memref<16x128xf32, #tpu.memory_space<vmem>>, vector<16x128xf32>
    %cst = arith.constant 9.99999974E-5 : f32
    %2 = vector.broadcast %cst : f32 to vector<16x128xf32>
    %3 = arith.maximumf %0, %2 : vector<16x128xf32>
    %4 = math.log %3 : vector<16x128xf32>
    %5 = arith.mulf %1, %4 : vector<16x128xf32>
    %cst_3 = arith.constant 0.000000e+00 : f32
    %6 = vector.broadcast %cst_3 : f32 to vector<16x128xf32>
    %7 = arith.subf %6, %5 : vector<16x128xf32>
    %8 = vector.shape_cast %7 : vector<16x128xf32> to vector<2x8x128xf32>
    %cst_4 = arith.constant dense<0.000000e+00> : vector<8x128xf32>
    %9 = vector.multi_reduction <add>, %8, %cst_4 [0] : vector<2x8x128xf32> to vector<8x128xf32>
    %c0_5 = arith.constant 0 : index
    %c0_6 = arith.constant 0 : index
    %10 = vector.load %arg3[%c0_5, %c0_6] : memref<8x128xf32, #tpu.memory_space<vmem>>, vector<8x128xf32>
    tpu.vector_store %arg3[%c0_5, %c0_6], %9 {strides = array<i32>} : memref<8x128xf32, #tpu.memory_space<vmem>>, vector<8x128xf32>,
    return
  }
  func.func @transform_0(%arg0: i32) -> (i32, i32) {
    %c0_i32 = arith.constant 0 : i32
    %c0_i32_0 = arith.constant 0 : i32
    return %arg0, %c0_i32 : i32, i32
  }
  func.func @transform_1(%arg0: i32) -> (i32, i32) {
    %c0_i32 = arith.constant 0 : i32
    %c0_i32_0 = arith.constant 0 : i32
    return %arg0, %c0_i32 : i32, i32
  }
  func.func @transform_2(%arg0: i32) -> (i32, i32) {
    %c0_i32 = arith.constant 0 : i32
    %c0_i32_0 = arith.constant 0 : i32
    return %arg0, %c0_i32 : i32, i32
  }
}

</mosaic_0001>

<bundles_post_ra>
// kernel: tpu_custom_call.1
= control target key start
LH: loop header
LB: loop body
LE: loop exit
PB: predicated region body
PF: predicated region fallthrough
CT: control target
= control target key end

     0   :  { %7 = vsyncpa [#allocation3], 0  ;;  %s209_s0 = inlined_call_operand.hbm [shape: f32[16,128], index: 0, kind: input, shape index: {}]   ;;  %s210_s1 = inlined_call_operand.hbm [shape: f32[16,128], index: 1, kind: input, shape index: {}]   ;;  %s211_s2 = inlined_call_operand.hbm [shape: f32[8,128], index: 2, kind: output, shape index: {}]  }
   0x1   :  { %8 = vsyncpa [#allocation6], 0 }
   0x2   :  { %9 = vsyncpa [#allocation4], 0  ;;  %s153_s9 = smov [#allocation2]   ;;  %s81_s13 = scalar_lea.hbm %s209_s0, 256 }
   0x3   :  { %s15_s10 = sshll.u32 %s153_s9, 4  ;;  %p82_p0 = scmp.ne.s32.totalorder %s209_s0, %s81_s13  ;;  %s16_s10 = int_to_ptr.vmem [resolvable:$true] %s15_s10 }
   0x4   :  { %p85_p1 = scmp.lt.u32.totalorder %s81_s13, %s209_s0 }
   0x6   :  { %p87_p2 = pnand %p85_p1, %p82_p0 }
   0x8   :  { %90 = shalt.err (!%p87_p2)
}
   0x9   :  { %s91_s18 = scalar_lea.vmem %s16_s10, 256  ;;  %p96_p4 = scmp.lt.s32.totalorder %s16_s10, %s16_s10 }
   0xa   :  { %p92_p3 = scmp.ne.s32.totalorder %s16_s10, %s91_s18  ;;  %p97_p5 = scmp.lt.s32.totalorder %s91_s18, %s91_s18 }
   0xc   :  { %p98_p6 = por %p97_p5, %p96_p4 }
   0xe   :  { %p99_p7 = pnand %p98_p6, %p92_p3 }
  0x10   :  { %102 = shalt.err (!%p99_p7)
}
  0x11   :  { %s154_s19 = smov 128   ;;  %s155_s20 = smov 8  }
  0x12   :  { %21 = dma.hbm_to_vmem [thread:$0]  %s209_s0, 256, %s16_s10, [#allocation3], %s154_s19, %s154_s19, %s155_s20  }
  0x13   :  { %s156_s23 = smov [#allocation5]   ;;  %s103_s27 = scalar_lea.hbm %s210_s1, 256 }
  0x14   :  { %s27_s24 = sshll.u32 %s156_s23, 4  ;;  %p104_p8 = scmp.ne.s32.totalorder %s210_s1, %s103_s27  ;;  %s28_s24 = int_to_ptr.vmem [resolvable:$true] %s27_s24 }
  0x15   :  { %p107_p9 = scmp.lt.u32.totalorder %s103_s27, %s210_s1 }
  0x17   :  { %p109_p10 = pnand %p107_p9, %p104_p8 }
  0x19   :  { %112 = shalt.err (!%p109_p10)
}
  0x1a   :  { %s113_s4 = scalar_lea.vmem %s28_s24, 256  ;;  %p118_p12 = scmp.lt.s32.totalorder %s28_s24, %s28_s24 }
  0x1b   :  { %p114_p11 = scmp.ne.s32.totalorder %s28_s24, %s113_s4  ;;  %p119_p13 = scmp.lt.s32.totalorder %s113_s4, %s113_s4 }
  0x1d   :  { %p120_p0 = por %p119_p13, %p118_p12 }
  0x1f   :  { %p121_p1 = pnand %p120_p0, %p114_p11 }
  0x21   :  { %124 = shalt.err (!%p121_p1)
}
  0x22   :  { %33 = dma.hbm_to_vmem [thread:$0]  %s210_s1, 256, %s28_s24, [#allocation6], %s154_s19, %s154_s19, %s155_s20  }
  0x23   :  { %147 = dma.done.wait [#allocation3], 256  }
  0x24   :  { %148 = vsyncadd [#allocation3], 4294967040 }
  0x25   :  { %149 = dma.done.wait [#allocation6], 256  }
  0x26   :  { %150 = vsyncadd [#allocation6], 4294967040  ;;  %v40_v0 = vld [vmem:[#allocation2] sm:$0xff]  ;;  %v41_v1 = vld [vmem:[#allocation2 + $0x8] sm:$0xff]  ;;  %s157_s1 = smov [#allocation7]  }
  0x27   :  { %v44_v2 = vmax.f32 %v40_v0, 0.0001  ;;  %v45_v3 = vmax.f32 %v41_v1, 0.0001  ;;  %v42_v5 = vld [vmem:[#allocation5] sm:$0xff]  ;;  %v43_v7 = vld [vmem:[#allocation5 + $0x8] sm:$0xff] }
  0x28   :  { %s62_s6 = sshll.u32 %s157_s1, 4  ;;  %s63_s6 = int_to_ptr.vmem [resolvable:$true] %s62_s6 }
  0x29   :  { %77 = vlog2.f32 %v44_v2  ;;  %s125_s7 = scalar_lea.vmem %s63_s6, 128  ;;  %p130_p3 = scmp.lt.s32.totalorder %s63_s6, %s63_s6 }
  0x2a   :  { %79 = vlog2.f32 %v45_v3  ;;  %p126_p2 = scmp.ne.s32.totalorder %s63_s6, %s125_s7  ;;  %p131_p4 = scmp.lt.s32.totalorder %s125_s7, %s125_s7 }
  0x2c   :  { %p132_p5 = por %p131_p4, %p130_p3 }
  0x2e   :  { %p133_p6 = pnand %p132_p5, %p126_p2 }
  0x33   :  { %v78_v4 = vpop.eup %77 }
  0x34   :  { %v80_v6 = vpop.eup %79  ;;  %v47_v8 = vmul.f32 0.6931472, %v78_v4 }
  0x35   :  { %v49_v9 = vmul.f32 0.6931472, %v80_v6 }
  0x36   :  { %v50_v10 = vmul.f32 %v47_v8, %v42_v5 }
  0x37   :  { %v51_v11 = vmul.f32 %v49_v9, %v43_v7 }
  0x38   :  { %v52_v12 = vsub.f32 0.0, %v50_v10 }
  0x39   :  { %v53_v13 = vsub.f32 0.0, %v51_v11 }
  0x3b   :  { %v54_v14 = vadd.f32 %v53_v13, %v52_v12 }
  0x3d   :  { %55 = vst [vmem:[#allocation7] sm:$0xff] %v54_v14 }
  0x3e   :  { %136 = shalt.err (!%p133_p6)
}
  0x3f   :  { %s137_s10 = scalar_lea.hbm %s211_s2, 128 }
  0x40   :  { %p138_p7 = scmp.ne.s32.totalorder %s211_s2, %s137_s10  ;;  %p141_p8 = scmp.lt.u32.totalorder %s137_s10, %s211_s2 }
  0x42   :  { %p143_p9 = pnand %p141_p8, %p138_p7 }
  0x44   :  { %146 = shalt.err (!%p143_p9)
}
  0x45   :  { %65 = dma.vmem_to_hbm [thread:$0]  %s63_s6, 128, %s211_s2, [#allocation4]  }
  0x46   :  { %151 = dma.done.wait [#allocation4], 128  }
  0x47   :  { %152 = vsyncadd [#allocation4], 4294967168 }
  0x48   :  { %69 = vsyncpa [#allocation3], 1 }
  0x49   :  { %70 = vsyncpa [#allocation6], 1 }
  0x4a   :  { %71 = vsyncpa [#allocation4], 1 }

</bundles_post_ra>
